<compile_context>
chip_gen: v7x
topology: tpu7x:2x2x1
jax: 0.10.0
libtpu: 0.0.40
codegen_flags: <defaults>
</compile_context>

<pallas_src>
import functools

import jax
import jax.numpy as jnp
from jax.experimental import pallas as pl
from jax.experimental.pallas import tpu as pltpu

HIDDEN_DIM = 64
T_MAX = 100


def _silu(v):
    # SiLU(v) = v * sigmoid(v).  sigmoid via tanh (== XLA's logistic
    # expansion) so the transcendental uses the EUP slot, not a VPU divide.
    return 0.5 * v * (jnp.tanh(0.5 * v) + 1.0)


def denoiser_kernel(
    xt_ref,                      # (tb, 3)   = [x | t]
    w1_ref, b1_ref,              # (3, 2H), (1, 2H)   block-diag(wx1, wt1)
    w2_ref, b2_ref,              # (2H, H), (1, H)    stacked [wx2; wt2], bx2+bt2
    wm1_ref, bm1_ref,            # (H, H),  (1, H)
    wm2_ref, bm2_ref,            # (H, 2),  (1, 2)
    out_ref,                     # (tb, 2)
):
    xt = xt_ref[...].astype(jnp.float32)

    # Fused embed stage 1: one (tb,3)@(3,2H) matmul computes both x_mlp[0]
    # and time_mlp[0] pre-activations side by side in the lane dimension.
    h1 = jnp.dot(xt, w1_ref[...], preferred_element_type=jnp.float32) + b1_ref[...]

    # Fused embed stage 2: K=2H reduction over [silu(x1) | silu(t1)] against
    # stacked [wx2; wt2] yields x_embed + t_embed directly (bias = bx2+bt2).
    h = jnp.dot(_silu(h1), w2_ref[...],
                preferred_element_type=jnp.float32) + b2_ref[...]

    # merge: SiLU -> Linear(H,H) -> SiLU -> Linear(H,2)
    m1 = jnp.dot(_silu(h), wm1_ref[...],
                 preferred_element_type=jnp.float32) + bm1_ref[...]
    out = jnp.dot(_silu(m1), wm2_ref[...],
                  preferred_element_type=jnp.float32) + bm2_ref[...]

    out_ref[...] = out.astype(out_ref.dtype)


def _full_spec(a):
    # Whole-array block, constant index across the batch grid axis, so the
    # packed weights (<60 KB total) stay resident in VMEM across the grid.
    return pl.BlockSpec(a.shape, lambda i: (0,) * a.ndim)


def _round_up(n, m):
    return ((n + m - 1) // m) * m


def _pack_params(params):
    """One-time packing of the 6 PyTorch Linears into fused kernel weights."""
    (wt1, bt1, wt2, bt2, wx1, bx1, wx2, bx2, wm1, bm1, wm2, bm2) = params
    H = wt1.shape[1]
    # Block-diagonal stage-1 weight: [x | t] (B,3) @ (3, 2H).
    w1 = jnp.zeros((3, 2 * H), jnp.float32)
    w1 = w1.at[:2, :H].set(wx1).at[2:, H:].set(wt1)
    b1 = jnp.concatenate([bx1, bt1], axis=1)          # (1, 2H)
    # Stacked stage-2 weight: silu([x1|t1]) (B,2H) @ (2H, H) = x_embed+t_embed.
    w2 = jnp.concatenate([wx2, wt2], axis=0)          # (2H, H)
    b2 = bx2 + bt2                                    # (1, H)
    return w1, b1, w2, b2, wm1, bm1, wm2, bm2


@functools.partial(jax.jit, static_argnames=("tb",))
def denoiser_mlp_forward(x, t, params, tb=1024):
    """x: (B, 2) float32, t: (B,) any numeric dtype -> (B, 2) float32.

    tb: max batch tile (rows per grid step).  Default 1024 keeps per-step
    overhead negligible while intermediates stay ~1.3 MB of VMEM.  For very
    large B the grid has many "parallel" steps, so both v7x TensorCores get
    work.
    """
    B = x.shape[0]
    t2d = t.astype(jnp.float32).reshape(B, 1)          # t.unsqueeze(1).float()
    xt = jnp.concatenate([x.astype(jnp.float32), t2d], axis=1)   # (B, 3)

    # Batch tile: multiple of 8 sublanes; shrink for small batches so we do
    # not pad tiny inputs all the way up to `tb`.
    rows = _round_up(B, 8)
    tb_eff = rows if rows <= tb else tb
    Bp = _round_up(B, tb_eff)
    if Bp != B:
        xt = jnp.pad(xt, ((0, Bp - B), (0, 0)))        # padded rows: junk, sliced off

    w1, b1, w2, b2, wm1, bm1, wm2, bm2 = _pack_params(params)

    grid = (Bp // tb_eff,)
    in_specs = [
        pl.BlockSpec((tb_eff, 3), lambda i: (i, 0)),   # fused [x | t] tile
        _full_spec(w1), _full_spec(b1),
        _full_spec(w2), _full_spec(b2),
        _full_spec(wm1), _full_spec(bm1),
        _full_spec(wm2), _full_spec(bm2),
    ]
    out_spec = pl.BlockSpec((tb_eff, 2), lambda i: (i, 0))

    out = pl.pallas_call(
        denoiser_kernel,
        out_shape=jax.ShapeDtypeStruct((Bp, 2), jnp.float32),
        grid_spec=pltpu.PrefetchScalarGridSpec(
            num_scalar_prefetch=0,
            grid=grid,
            in_specs=in_specs,
            out_specs=out_spec,
        ),
        compiler_params=pltpu.CompilerParams(
            # Batch axis is embarrassingly parallel -> megacore shards it.
            dimension_semantics=("parallel",),
            # Defaults suffice for tb=1024 on v5e/v6e/v7x; vmem_limit_bytes
            # only needs raising if tb is pushed far beyond 4096 on v5e.
        ),
    )(xt, w1, b1, w2, b2, wm1, bm1, wm2, bm2)

    return out[:B]


def init_params(key, hidden_dim=HIDDEN_DIM):
    """Deterministic synthetic parameters.

    PyTorch Linear(in, out) has weight (out, in), bias (out,).  We store the
    weight transposed as (in, out) and bias as (1, out) for lane-major use.
    """
    def linear(key, in_dim, out_dim):
        kw, kb = jax.random.split(key)
        bound = 1.0 / jnp.sqrt(in_dim)
        w = jax.random.uniform(kw, (in_dim, out_dim), jnp.float32, -bound, bound)
        b = jax.random.uniform(kb, (1, out_dim), jnp.float32, -bound, bound)
        return w, b

    keys = jax.random.split(key, 6)
    wt1, bt1 = linear(keys[0], 1, hidden_dim)            # time_mlp[0]
    wt2, bt2 = linear(keys[1], hidden_dim, hidden_dim)   # time_mlp[2]
    wx1, bx1 = linear(keys[2], 2, hidden_dim)            # x_mlp[0]
    wx2, bx2 = linear(keys[3], hidden_dim, hidden_dim)   # x_mlp[2]
    wm1, bm1 = linear(keys[4], hidden_dim, hidden_dim)   # merge[1]
    wm2, bm2 = linear(keys[5], hidden_dim, 2)            # merge[3]
    return (wt1, bt1, wt2, bt2, wx1, bx1, wx2, bx2, wm1, bm1, wm2, bm2)


def reference_forward(x, t, params):
    """Pure-JAX reference (unfused weights) for correctness checking."""
    (wt1, bt1, wt2, bt2, wx1, bx1, wx2, bx2, wm1, bm1, wm2, bm2) = params
    silu = lambda v: v * jax.nn.sigmoid(v)
    t2d = t.astype(jnp.float32).reshape(-1, 1)
    t_embed = silu(t2d @ wt1 + bt1) @ wt2 + bt2
    x_embed = silu(x @ wx1 + bx1) @ wx2 + bx2
    h = x_embed + t_embed
    return silu(silu(h) @ wm1 + bm1) @ wm2 + bm2


if __name__ == "__main__":
    key = jax.random.PRNGKey(0)
    kp, kx, kt = jax.random.split(key, 3)

    B = 50
    params = init_params(kp)
    x = jax.random.normal(kx, (B, 2), jnp.float32)
    t = jax.random.randint(kt, (B,), 0, T_MAX)   # integer timesteps, like PyTorch

    ref = reference_forward(x, t, params)

    # Default path (single tile at this small B) and an explicit multi-step
    # grid path (exercises tiling, batch padding, and the final slice).
    out = jax.block_until_ready(denoiser_mlp_forward(x, t, params))
    out_tiled = jax.block_until_ready(denoiser_mlp_forward(x, t, params, tb=16))

    # Tolerance slack covers transcendental-implementation differences between
    # Mosaic and XLA (pre-activations reach |v| ~ 100 because raw integer
    # timesteps feed Linear(1, H)).
    for o in (out, out_tiled):
        assert o.shape == (B, 2), o.shape
        assert jnp.allclose(o, ref, atol=2e-3, rtol=2e-3), (
            float(jnp.max(jnp.abs(o - ref))))

    print("KERNEL_OK")
</pallas_src>

<mosaic_0001>
module attributes {stable_mosaic.version = 11 : i64} {
  func.func @denoiser_kernel(%arg0: i32, %arg1: memref<56x3xf32, #tpu.memory_space<vmem>>, %arg2: memref<3x128xf32, #tpu.memory_space<vmem>>, %arg3: memref<1x128xf32, #tpu.memory_space<vmem>>, %arg4: memref<128x64xf32, #tpu.memory_space<vmem>>, %arg5: memref<1x64xf32, #tpu.memory_space<vmem>>, %arg6: memref<64x64xf32, #tpu.memory_space<vmem>>, %arg7: memref<1x64xf32, #tpu.memory_space<vmem>>, %arg8: memref<64x2xf32, #tpu.memory_space<vmem>>, %arg9: memref<1x2xf32, #tpu.memory_space<vmem>>, %arg10: memref<56x2xf32, #tpu.memory_space<vmem>>) attributes {dimension_semantics = [#tpu.dimension_semantics<parallel>], iteration_bounds = array<i64: 1>, scalar_prefetch = 0 : i64, scratch_operands = 0 : i64, tpu.core_type = #tpu.core_type<tc>, window_params = [{transform_indices = @transform_0, window_bounds = array<i64: 56, 3>}, {pipeline_mode = #tpu.pipeline_mode<synchronous>, transform_indices = @transform_1, window_bounds = array<i64: 3, 128>}, {pipeline_mode = #tpu.pipeline_mode<synchronous>, transform_indices = @transform_2, window_bounds = array<i64: 1, 128>}, {pipeline_mode = #tpu.pipeline_mode<synchronous>, transform_indices = @transform_3, window_bounds = array<i64: 128, 64>}, {pipeline_mode = #tpu.pipeline_mode<synchronous>, transform_indices = @transform_4, window_bounds = array<i64: 1, 64>}, {pipeline_mode = #tpu.pipeline_mode<synchronous>, transform_indices = @transform_5, window_bounds = array<i64: 64, 64>}, {pipeline_mode = #tpu.pipeline_mode<synchronous>, transform_indices = @transform_6, window_bounds = array<i64: 1, 64>}, {pipeline_mode = #tpu.pipeline_mode<synchronous>, transform_indices = @transform_7, window_bounds = array<i64: 64, 2>}, {pipeline_mode = #tpu.pipeline_mode<synchronous>, transform_indices = @transform_8, window_bounds = array<i64: 1, 2>}, {transform_indices = @transform_9, window_bounds = array<i64: 56, 2>}]} {
    %c0 = arith.constant 0 : index
    %c0_0 = arith.constant 0 : index
    %0 = vector.load %arg1[%c0, %c0_0] : memref<56x3xf32, #tpu.memory_space<vmem>>, vector<56x3xf32>
    %c0_1 = arith.constant 0 : index
    %c0_2 = arith.constant 0 : index
    %1 = vector.load %arg2[%c0_1, %c0_2] : memref<3x128xf32, #tpu.memory_space<vmem>>, vector<3x128xf32>
    %cst = arith.constant dense<0.000000e+00> : vector<56x128xf32>
    %2 = tpu.matmul %0, %1, %cst {dimension_numbers = #tpu.dot_dimension_numbers<[1], [0], [0], [1], [0, 0, 1, 1], [], []>} : vector<56x3xf32>, vector<3x128xf32>, vector<56x128xf32> -> vector<56x128xf32>
    %c0_3 = arith.constant 0 : index
    %c0_4 = arith.constant 0 : index
    %3 = vector.load %arg3[%c0_3, %c0_4] : memref<1x128xf32, #tpu.memory_space<vmem>>, vector<1x128xf32>
    %4 = vector.broadcast %3 : vector<1x128xf32> to vector<56x128xf32>
    %5 = arith.addf %2, %4 : vector<56x128xf32>
    %cst_5 = arith.constant 5.000000e-01 : f32
    %6 = vector.broadcast %cst_5 : f32 to vector<56x128xf32>
    %7 = arith.mulf %6, %5 : vector<56x128xf32>
    %cst_6 = arith.constant 5.000000e-01 : f32
    %8 = vector.broadcast %cst_6 : f32 to vector<56x128xf32>
    %9 = arith.mulf %8, %5 : vector<56x128xf32>
    %10 = math.tanh %9 : vector<56x128xf32>
    %cst_7 = arith.constant 1.000000e+00 : f32
    %11 = vector.broadcast %cst_7 : f32 to vector<56x128xf32>
    %12 = arith.addf %10, %11 : vector<56x128xf32>
    %13 = arith.mulf %7, %12 : vector<56x128xf32>
    %c0_8 = arith.constant 0 : index
    %c0_9 = arith.constant 0 : index
    %14 = vector.load %arg4[%c0_8, %c0_9] : memref<128x64xf32, #tpu.memory_space<vmem>>, vector<128x64xf32>
    %cst_10 = arith.constant dense<0.000000e+00> : vector<56x64xf32>
    %15 = tpu.matmul %13, %14, %cst_10 {dimension_numbers = #tpu.dot_dimension_numbers<[1], [0], [0], [1], [0, 0, 1, 1], [], []>} : vector<56x128xf32>, vector<128x64xf32>, vector<56x64xf32> -> vector<56x64xf32>
    %c0_11 = arith.constant 0 : index
    %c0_12 = arith.constant 0 : index
    %16 = vector.load %arg5[%c0_11, %c0_12] : memref<1x64xf32, #tpu.memory_space<vmem>>, vector<1x64xf32>
    %17 = vector.broadcast %16 : vector<1x64xf32> to vector<56x64xf32>
    %18 = arith.addf %15, %17 : vector<56x64xf32>
    %cst_13 = arith.constant 5.000000e-01 : f32
    %19 = vector.broadcast %cst_13 : f32 to vector<56x64xf32>
    %20 = arith.mulf %19, %18 : vector<56x64xf32>
    %cst_14 = arith.constant 5.000000e-01 : f32
    %21 = vector.broadcast %cst_14 : f32 to vector<56x64xf32>
    %22 = arith.mulf %21, %18 : vector<56x64xf32>
    %23 = math.tanh %22 : vector<56x64xf32>
    %cst_15 = arith.constant 1.000000e+00 : f32
    %24 = vector.broadcast %cst_15 : f32 to vector<56x64xf32>
    %25 = arith.addf %23, %24 : vector<56x64xf32>
    %26 = arith.mulf %20, %25 : vector<56x64xf32>
    %c0_16 = arith.constant 0 : index
    %c0_17 = arith.constant 0 : index
    %27 = vector.load %arg6[%c0_16, %c0_17] : memref<64x64xf32, #tpu.memory_space<vmem>>, vector<64x64xf32>
    %cst_18 = arith.constant dense<0.000000e+00> : vector<56x64xf32>
    %28 = tpu.matmul %26, %27, %cst_18 {dimension_numbers = #tpu.dot_dimension_numbers<[1], [0], [0], [1], [0, 0, 1, 1], [], []>} : vector<56x64xf32>, vector<64x64xf32>, vector<56x64xf32> -> vector<56x64xf32>
    %c0_19 = arith.constant 0 : index
    %c0_20 = arith.constant 0 : index
    %29 = vector.load %arg7[%c0_19, %c0_20] : memref<1x64xf32, #tpu.memory_space<vmem>>, vector<1x64xf32>
    %30 = vector.broadcast %29 : vector<1x64xf32> to vector<56x64xf32>
    %31 = arith.addf %28, %30 : vector<56x64xf32>
    %cst_21 = arith.constant 5.000000e-01 : f32
    %32 = vector.broadcast %cst_21 : f32 to vector<56x64xf32>
    %33 = arith.mulf %32, %31 : vector<56x64xf32>
    %cst_22 = arith.constant 5.000000e-01 : f32
    %34 = vector.broadcast %cst_22 : f32 to vector<56x64xf32>
    %35 = arith.mulf %34, %31 : vector<56x64xf32>
    %36 = math.tanh %35 : vector<56x64xf32>
    %cst_23 = arith.constant 1.000000e+00 : f32
    %37 = vector.broadcast %cst_23 : f32 to vector<56x64xf32>
    %38 = arith.addf %36, %37 : vector<56x64xf32>
    %39 = arith.mulf %33, %38 : vector<56x64xf32>
    %c0_24 = arith.constant 0 : index
    %c0_25 = arith.constant 0 : index
    %40 = vector.load %arg8[%c0_24, %c0_25] : memref<64x2xf32, #tpu.memory_space<vmem>>, vector<64x2xf32>
    %cst_26 = arith.constant dense<0.000000e+00> : vector<56x2xf32>
    %41 = tpu.matmul %39, %40, %cst_26 {dimension_numbers = #tpu.dot_dimension_numbers<[1], [0], [0], [1], [0, 0, 1, 1], [], []>} : vector<56x64xf32>, vector<64x2xf32>, vector<56x2xf32> -> vector<56x2xf32>
    %c0_27 = arith.constant 0 : index
    %c0_28 = arith.constant 0 : index
    %42 = vector.load %arg9[%c0_27, %c0_28] : memref<1x2xf32, #tpu.memory_space<vmem>>, vector<1x2xf32>
    %43 = vector.broadcast %42 : vector<1x2xf32> to vector<56x2xf32>
    %44 = arith.addf %41, %43 : vector<56x2xf32>
    %c0_29 = arith.constant 0 : index
    %c0_30 = arith.constant 0 : index
    %45 = vector.load %arg10[%c0_29, %c0_30] : memref<56x2xf32, #tpu.memory_space<vmem>>, vector<56x2xf32>
    tpu.vector_store %arg10[%c0_29, %c0_30], %44 {strides = array<i32>} : memref<56x2xf32, #tpu.memory_space<vmem>>, vector<56x2xf32>,
    return
  }
  func.func @transform_0(%arg0: i32) -> (i32, i32) {
    %c0_i32 = arith.constant 0 : i32
    %c0_i32_0 = arith.constant 0 : i32
    return %arg0, %c0_i32 : i32, i32
  }
  func.func @transform_1(%arg0: i32) -> (i32, i32) {
    %c0_i32 = arith.constant 0 : i32
    %c0_i32_0 = arith.constant 0 : i32
    %c0_i32_1 = arith.constant 0 : i32
    return %c0_i32, %c0_i32_0 : i32, i32
  }
  func.func @transform_2(%arg0: i32) -> (i32, i32) {
    %c0_i32 = arith.constant 0 : i32
    %c0_i32_0 = arith.constant 0 : i32
    %c0_i32_1 = arith.constant 0 : i32
    return %c0_i32, %c0_i32_0 : i32, i32
  }
  func.func @transform_3(%arg0: i32) -> (i32, i32) {
    %c0_i32 = arith.constant 0 : i32
    %c0_i32_0 = arith.constant 0 : i32
    %c0_i32_1 = arith.constant 0 : i32
    return %c0_i32, %c0_i32_0 : i32, i32
  }
  func.func @transform_4(%arg0: i32) -> (i32, i32) {
    %c0_i32 = arith.constant 0 : i32
    %c0_i32_0 = arith.constant 0 : i32
    %c0_i32_1 = arith.constant 0 : i32
    return %c0_i32, %c0_i32_0 : i32, i32
  }
  func.func @transform_5(%arg0: i32) -> (i32, i32) {
    %c0_i32 = arith.constant 0 : i32
    %c0_i32_0 = arith.constant 0 : i32
    %c0_i32_1 = arith.constant 0 : i32
    return %c0_i32, %c0_i32_0 : i32, i32
  }
  func.func @transform_6(%arg0: i32) -> (i32, i32) {
    %c0_i32 = arith.constant 0 : i32
    %c0_i32_0 = arith.constant 0 : i32
    %c0_i32_1 = arith.constant 0 : i32
    return %c0_i32, %c0_i32_0 : i32, i32
  }
  func.func @transform_7(%arg0: i32) -> (i32, i32) {
    %c0_i32 = arith.constant 0 : i32
    %c0_i32_0 = arith.constant 0 : i32
    %c0_i32_1 = arith.constant 0 : i32
    return %c0_i32, %c0_i32_0 : i32, i32
  }
  func.func @transform_8(%arg0: i32) -> (i32, i32) {
    %c0_i32 = arith.constant 0 : i32
    %c0_i32_0 = arith.constant 0 : i32
    %c0_i32_1 = arith.constant 0 : i32
    return %c0_i32, %c0_i32_0 : i32, i32
  }
  func.func @transform_9(%arg0: i32) -> (i32, i32) {
    %c0_i32 = arith.constant 0 : i32
    %c0_i32_0 = arith.constant 0 : i32
    return %arg0, %c0_i32 : i32, i32
  }
}

</mosaic_0001>

<bundles_post_ra>
// kernel: denoiser_mlp_forward.1
= control target key start
LH: loop header
LB: loop body
LE: loop exit
PB: predicated region body
PF: predicated region fallthrough
CT: control target
= control target key end

     0   :  { %vm69_vm0 = vcmask 1042432   ;;  %vm47_vm1 = vcmask 23552   ;;  %v1003_v0 = vmov 0.0   ;;  %vm1004_vm2 = vmmov 0   ;;  %s1314_s1 = inlined_call_operand.vmem [shape: f32[3,128], index: 1, kind: input, shape index: {}]   ;;  %s1315_s0 = inlined_call_operand.vmem [shape: f32[56,3], index: 0, kind: input, shape index: {}]   ;;  %s1316_s3 = inlined_call_operand.vmem [shape: f32[128,64], index: 3, kind: input, shape index: {}]   ;;  %s1317_s2 = inlined_call_operand.vmem [shape: f32[1,128], index: 2, kind: input, shape index: {}]   ;;  %s1318_s5 = inlined_call_operand.vmem [shape: f32[64,64], index: 5, kind: input, shape index: {}]   ;;  %s1319_s4 = inlined_call_operand.vmem [shape: f32[1,64], index: 4, kind: input, shape index: {}]   ;;  %s1320_s7 = inlined_call_operand.vmem [shape: f32[64,2], index: 7, kind: input, shape index: {}]   ;;  %s1321_s6 = inlined_call_operand.vmem [shape: f32[1,64], index: 6, kind: input, shape index: {}]   ;;  %s1322_s8 = inlined_call_operand.vmem [shape: f32[1,2], index: 8, kind: input, shape index: {}]   ;;  %s1323_s9 = inlined_call_operand.vmem [shape: f32[56,2], index: 9, kind: output, shape index: {}]  }
   0x1   :  { %752 = vmatprep.subr.mxu1 %v1003_v0  ;;  %v39_v1 = vld [vmem:[%s1314_s1] sm:$0x7]  ;;  %754 = vmatprep.mubr.msk.f32.mxu1 %vm1004_vm2, %v1003_v0  ;;  %v1005_v3 = vmov 0.0|0.0   ;;  %v33_v5 = vld [vmem:[%s1315_s0 + $0x8] sm:$0xff]  ;;  %v203_v8 = vld [vmem:[%s1316_s3 + $0x10] sm:$0xff]  ;;  %vm367_vm3 = vcmask 523264  }
   0x2   :  { %v32_v2 = vld [vmem:[%s1315_s0] sm:$0xff]  ;;  %753 = vmatpush3.msk.msra.mxu1 %vm69_vm0, %v39_v1  ;;  %926 = vmatprep.subr.bf16.mxu0 %v1005_v3  ;;  %v202_v6 = vld [vmem:[%s1316_s3 + $0x8] sm:$0xff]  ;;  %v204_v9 = vld [vmem:[%s1316_s3 + $0x18] sm:$0xff]  ;;  %vm653_vm4 = vcmask 15360  }
   0x3   :  { %755 = vmatmul.mubr.msk.f32.vlgmr.msra.gmra.mrb[0].mxu1 %vm47_vm1, %v32_v2  ;;  %902 = vmatprep.subr.bf16.mxu1 %v1005_v3  ;;  %v201_v4 = vld [vmem:[%s1316_s3] sm:$0xff]  ;;  %v34_v10 = vld [vmem:[%s1315_s0 + $0x10] sm:$0xff]  ;;  %v906_v11 = vpack.c.bf16 %v204_v9, %v203_v8  ;;  %v206_v13 = vld [vmem:[%s1316_s3 + $0x28] sm:$0xff] }
   0x4   :  { %757 = vmatprep.mubr.msk.f32.mxu1 %vm1004_vm2, %v1003_v0  ;;  %844 = vmatprep.mubr.msk.f32.mxu0 %vm1004_vm2, %v1003_v0  ;;  %v903_v7 = vpack.c.bf16 %v202_v6, %v201_v4  ;;  %v205_v12 = vld [vmem:[%s1316_s3 + $0x20] sm:$0xff]  ;;  %v35_v14 = vld [vmem:[%s1315_s0 + $0x18] sm:$0xff]  ;;  %v37_v17 = vld [vmem:[%s1315_s0 + $0x28] sm:$0xff] }
   0x5   :  { %v909_v15 = vpack.c.bf16 %v206_v13, %v205_v12  ;;  %v36_v16 = vld [vmem:[%s1315_s0 + $0x20] sm:$0xff]  ;;  %v38_v18 = vld [vmem:[%s1315_s0 + $0x30] sm:$0xff]  ;;  %v208_v20 = vld [vmem:[%s1316_s3 + $0x38] sm:$0xff] }
   0x6   :  { %904 = vmatpush3.bf16.msra.mxu1 %v903_v7  ;;  %v207_v19 = vld [vmem:[%s1316_s3 + $0x30] sm:$0xff]  ;;  %v209_v22 = vld [vmem:[%s1316_s3 + $0x40] sm:$0xff]  ;;  %v210_v23 = vld [vmem:[%s1316_s3 + $0x48] sm:$0xff] }
   0x7   :  { %758 = vmatmul.mubr.msk.f32.gmra.mrb[2].mxu1 %vm47_vm1, %v33_v5  ;;  %905 = vmatprep.subr.bf16.mxu1 %v1005_v3  ;;  %v912_v21 = vpack.c.bf16 %v208_v20, %v207_v19  ;;  %v915_v24 = vpack.c.bf16 %v210_v23, %v209_v22  ;;  %v211_v25 = vld [vmem:[%s1316_s3 + $0x50] sm:$0xff]  ;;  %v212_v26 = vld [vmem:[%s1316_s3 + $0x58] sm:$0xff]  ;;  %v213_v28 = vld [vmem:[%s1316_s3 + $0x60] sm:$0xff] }
   0x8   :  { %760 = vmatprep.mubr.msk.f32.mxu1 %vm1004_vm2, %v1003_v0  ;;  %v918_v27 = vpack.c.bf16 %v212_v26, %v211_v25  ;;  %v214_v29 = vld [vmem:[%s1316_s3 + $0x68] sm:$0xff]  ;;  %v215_v31 = vld [vmem:[%s1316_s3 + $0x70] sm:$0xff]  ;;  %v216_v32 = vld [vmem:[%s1316_s3 + $0x78] sm:$0xff] }
   0x9   :  { %v921_v30 = vpack.c.bf16 %v214_v29, %v213_v28  ;;  %v924_v33 = vpack.c.bf16 %v216_v32, %v215_v31  ;;  %v665_v34 = vld [vmem:[%s1317_s2] ss:$0 sm:$0xff]  ;;  %v353_v23 = vld [vmem:[%s1318_s5 + $0x8] sm:$0xff]  ;;  %v354_v25 = vld [vmem:[%s1318_s5 + $0x10] sm:$0xff] }
   0xa   :  { %907 = vmatpush3.bf16.msra.mxu1 %v906_v11  ;;  %v352_v22 = vld [vmem:[%s1318_s5] sm:$0xff]  ;;  %v355_v26 = vld [vmem:[%s1318_s5 + $0x18] sm:$0xff]  ;;  %v357_v29 = vld [vmem:[%s1318_s5 + $0x28] sm:$0xff] }
   0xb   :  { %761 = vmatmul.mubr.msk.f32.gmra.mrb[4].mxu1 %vm47_vm1, %v34_v10  ;;  %908 = vmatprep.subr.bf16.mxu1 %v1005_v3  ;;  %v356_v28 = vld [vmem:[%s1318_s5 + $0x20] sm:$0xff]  ;;  %v358_v31 = vld [vmem:[%s1318_s5 + $0x30] sm:$0xff]  ;;  %v359_v32 = vld [vmem:[%s1318_s5 + $0x38] sm:$0xff] }
   0xc   :  { %763 = vmatprep.mubr.msk.f32.mxu1 %vm1004_vm2, %v1003_v0 }
   0xe   :  { %910 = vmatpush3.bf16.msra.mxu1 %v909_v15 }
   0xf   :  { %764 = vmatmul.mubr.msk.f32.gmra.mrb[6].mxu1 %vm47_vm1, %v35_v14  ;;  %911 = vmatprep.subr.bf16.mxu1 %v1005_v3 }
  0x10   :  { %766 = vmatprep.mubr.msk.f32.mxu1 %vm1004_vm2, %v1003_v0 }
  0x12   :  { %913 = vmatpush3.bf16.msra.mxu1 %v912_v21 }
  0x13   :  { %767 = vmatmul.mubr.msk.f32.gmra.mrb[8].mxu1 %vm47_vm1, %v36_v16  ;;  %914 = vmatprep.subr.bf16.mxu1 %v1005_v3 }
  0x14   :  { %769 = vmatprep.mubr.msk.f32.mxu1 %vm1004_vm2, %v1003_v0 }
  0x16   :  { %916 = vmatpush3.bf16.msra.mxu1 %v915_v24  ;;  %v927_v24 = vpack.c.bf16 %v353_v23, %v352_v22 }
  0x17   :  { %770 = vmatmul.mubr.msk.f32.gmra.mrb[10].mxu1 %vm47_vm1, %v37_v17  ;;  %917 = vmatprep.subr.bf16.mxu1 %v1005_v3 }
  0x18   :  { %772 = vmatprep.mubr.msk.f32.mxu1 %vm1004_vm2, %v1003_v0  ;;  %928 = vmatpush3.bf16.msra.mxu0 %v927_v24 }
  0x19   :  { %929 = vmatprep.subr.bf16.mxu0 %v1005_v3 }
  0x1a   :  { %919 = vmatpush3.bf16.msra.mxu1 %v918_v27  ;;  %v930_v27 = vpack.c.bf16 %v355_v26, %v354_v25  ;;  %v519_v25 = vld [vmem:[%s1320_s7 + $0x10] sm:$0xff]  ;;  %v520_v26 = vld [vmem:[%s1320_s7 + $0x18] sm:$0xff] }
  0x1b   :  { %773 = vmatmul.mubr.msk.f32.gmra.mrb[12].mxu1 %vm47_vm1, %v38_v18  ;;  %920 = vmatprep.subr.bf16.mxu1 %v1005_v3 }
  0x1c   :  { %807 = vmatprep.mubr.msk.f32.mxu1 %vm1004_vm2, %v1003_v0  ;;  %931 = vmatpush3.bf16.msra.mxu0 %v930_v27 }
  0x1d   :  { %932 = vmatprep.subr.bf16.mxu0 %v1005_v3 }
  0x1e   :  { %922 = vmatpush3.bf16.msra.mxu1 %v921_v30  ;;  %v933_v30 = vpack.c.bf16 %v357_v29, %v356_v28  ;;  %v521_v28 = vld [vmem:[%s1320_s7 + $0x20] sm:$0xff]  ;;  %v522_v29 = vld [vmem:[%s1320_s7 + $0x28] sm:$0xff] }
  0x1f   :  { %923 = vmatprep.subr.bf16.mxu1 %v1005_v3 }
  0x20   :  { %934 = vmatpush3.bf16.msra.mxu0 %v933_v30 }
  0x21   :  { %935 = vmatprep.subr.bf16.mxu0 %v1005_v3 }
  0x22   :  { %925 = vmatpush3.bf16.msra.mxu1 %v924_v33  ;;  %v936_v33 = vpack.c.bf16 %v359_v32, %v358_v31  ;;  %v523_v31 = vld [vmem:[%s1320_s7 + $0x30] sm:$0xff]  ;;  %v524_v32 = vld [vmem:[%s1320_s7 + $0x38] sm:$0xff] }
  0x23   :  { %950 = vmatprep.subr.bf16.mxu1 %v1005_v3 }
  0x24   :  { %937 = vmatpush3.bf16.msra.mxu0 %v936_v33 }
  0x25   :  { %938 = vmatprep.subr.bf16.mxu0 %v1005_v3 }
  0xd6   :  { %v139_v35 = vpop.f32.mrb[0].mxu1 }
  0xd7   :  { %v140_v36 = vadd.f32 %v665_v34, %v139_v35  ;;  %v756_v37 = vpop.f32.mrb[1].mxu1 }
  0xd9   :  { %v173_v38 = vmul.f32 0.5, %v140_v36 }
  0xda   :  { %v144_v39 = vpop.f32.mrb[2].mxu1 }
  0xdb   :  { %961 = vtanh.f32 %v173_v38  ;;  %v145_v40 = vadd.f32 %v665_v34, %v144_v39  ;;  %v759_v41 = vpop.f32.mrb[3].mxu1 }
  0xdd   :  { %v174_v42 = vmul.f32 0.5, %v145_v40 }
  0xde   :  { %v149_v43 = vpop.f32.mrb[4].mxu1 }
  0xdf   :  { %963 = vtanh.f32 %v174_v42  ;;  %v150_v44 = vadd.f32 %v665_v34, %v149_v43  ;;  %v762_v45 = vpop.f32.mrb[5].mxu1 }
  0xe1   :  { %v175_v46 = vmul.f32 0.5, %v150_v44 }
  0xe2   :  { %v154_v47 = vpop.f32.mrb[6].mxu1 }
  0xe3   :  { %965 = vtanh.f32 %v175_v46  ;;  %v155_v48 = vadd.f32 %v665_v34, %v154_v47  ;;  %v765_v49 = vpop.f32.mrb[7].mxu1 }
  0xe5   :  { %v962_v50 = vpop.eup %961  ;;  %v176_v51 = vmul.f32 0.5, %v155_v48 }
  0xe6   :  { %v187_v52 = vadd.f32 1.0, %v962_v50  ;;  %v159_v53 = vpop.f32.mrb[8].mxu1  ;;  %v517_v50 = vld [vmem:[%s1320_s7] sm:$0xff] }
  0xe7   :  { %967 = vtanh.f32 %v176_v51  ;;  %v160_v54 = vadd.f32 %v665_v34, %v159_v53  ;;  %v768_v55 = vpop.f32.mrb[9].mxu1 }
  0xe8   :  { %v194_v56 = vmul.f32 %v187_v52, %v173_v38 }
  0xe9   :  { %v964_v57 = vpop.eup %963  ;;  %v177_v58 = vmul.f32 0.5, %v160_v54 }
  0xea   :  { %v188_v59 = vadd.f32 1.0, %v964_v57  ;;  %v164_v60 = vpop.f32.mrb[10].mxu1  ;;  %808 = vmatmul.mubr.f32.vlgmr.msra.gmra.mrb[14].mxu1 %v194_v56 }
  0xeb   :  { %969 = vtanh.f32 %v177_v58  ;;  %v165_v61 = vadd.f32 %v665_v34, %v164_v60  ;;  %v771_v62 = vpop.f32.mrb[11].mxu1  ;;  %810 = vmatprep.mubr.msk.f32.mxu1 %vm1004_vm2, %v1003_v0  ;;  %954 = vmatpush3.bf16.msra.mxu1 %v927_v24 }
  0xec   :  { %v195_v63 = vmul.f32 %v188_v59, %v174_v42  ;;  %951 = vmatprep.subr.bf16.mxu1 %v1005_v3 }
  0xed   :  { %v966_v1 = vpop.eup %965  ;;  %v178_v2 = vmul.f32 0.5, %v165_v61 }
  0xee   :  { %v189_v4 = vadd.f32 1.0, %v966_v1  ;;  %v169_v5 = vpop.f32.mrb[12].mxu1  ;;  %811 = vmatmul.mubr.f32.gmra.mrb[16].mxu1 %v195_v63 }
  0xef   :  { %971 = vtanh.f32 %v178_v2  ;;  %v170_v6 = vadd.f32 %v665_v34, %v169_v5  ;;  %v774_v7 = vpop.f32.mrb[13].mxu1  ;;  %813 = vmatprep.mubr.msk.f32.mxu1 %vm1004_vm2, %v1003_v0  ;;  %955 = vmatpush3.bf16.msra.mxu1 %v930_v27  ;;  %v674_v34 = vld [vmem:[%s1319_s4] ss:$0 sm:$0xff]  ;;  %v942_v27 = vpack.c.bf16 %v520_v26, %v519_v25 }
  0xf0   :  { %v196_v8 = vmul.f32 %v189_v4, %v175_v46  ;;  %952 = vmatprep.subr.bf16.mxu1 %v1005_v3 }
  0xf1   :  { %v968_v9 = vpop.eup %967  ;;  %v179_v10 = vmul.f32 0.5, %v170_v6 }
  0xf2   :  { %v190_v11 = vadd.f32 1.0, %v968_v9  ;;  %814 = vmatmul.mubr.f32.gmra.mrb[18].mxu1 %v196_v8 }
  0xf3   :  { %973 = vtanh.f32 %v179_v10  ;;  %816 = vmatprep.mubr.msk.f32.mxu1 %vm1004_vm2, %v1003_v0  ;;  %956 = vmatpush3.bf16.msra.mxu1 %v933_v30  ;;  %v945_v30 = vpack.c.bf16 %v522_v29, %v521_v28 }
  0xf4   :  { %v197_v12 = vmul.f32 %v190_v11, %v176_v51  ;;  %953 = vmatprep.subr.bf16.mxu1 %v1005_v3  ;;  %v518_v51 = vld [vmem:[%s1320_s7 + $0x8] sm:$0xff] }
  0xf5   :  { %v970_v13 = vpop.eup %969 }
  0xf6   :  { %v191_v14 = vadd.f32 1.0, %v970_v13  ;;  %817 = vmatmul.mubr.f32.gmra.mrb[20].mxu1 %v197_v12 }
  0xf7   :  { %819 = vmatprep.mubr.msk.f32.mxu1 %vm1004_vm2, %v1003_v0  ;;  %957 = vmatpush3.bf16.msra.mxu1 %v936_v33  ;;  %v948_v33 = vpack.c.bf16 %v524_v32, %v523_v31 }
  0xf8   :  { %v198_v15 = vmul.f32 %v191_v14, %v177_v58  ;;  %v939_v58 = vpack.c.bf16 %v518_v51, %v517_v50 }
  0xf9   :  { %v972_v16 = vpop.eup %971 }
  0xfa   :  { %v192_v17 = vadd.f32 1.0, %v972_v16  ;;  %820 = vmatmul.mubr.f32.gmra.mrb[22].mxu1 %v198_v15 }
  0xfb   :  { %822 = vmatprep.mubr.msk.f32.mxu1 %vm1004_vm2, %v1003_v0 }
  0xfc   :  { %v199_v18 = vmul.f32 %v192_v17, %v178_v2 }
  0xfd   :  { %v974_v19 = vpop.eup %973 }
  0xfe   :  { %v193_v20 = vadd.f32 1.0, %v974_v19  ;;  %823 = vmatmul.mubr.f32.gmra.mrb[24].mxu1 %v199_v18 }
  0xff   :  { %825 = vmatprep.mubr.msk.f32.mxu1 %vm1004_vm2, %v1003_v0 }
 0x100   :  { %v200_v21 = vmul.f32 %v193_v20, %v179_v10 }
 0x102   :  { %826 = vmatmul.mubr.f32.gmra.mrb[26].mxu1 %v200_v21 }
 0x103   :  { %862 = vmatprep.mubr.msk.f32.mxu1 %vm1004_vm2, %v1003_v0 }
 0x1bd   :  { %v290_v35 = vpop.f32.mrb[14].mxu1 }
 0x1be   :  { %v291_v36 = vadd.f32 %v674_v34, %v290_v35  ;;  %v809_v37 = vpop.f32.mrb[15].mxu1 }
 0x1c0   :  { %v324_v38 = vmul.f32 0.5, %v291_v36 }
 0x1c1   :  { %v295_v39 = vpop.f32.mrb[16].mxu1 }
 0x1c2   :  { %975 = vtanh.f32 %v324_v38  ;;  %v296_v40 = vadd.f32 %v674_v34, %v295_v39  ;;  %v812_v41 = vpop.f32.mrb[17].mxu1 }
 0x1c4   :  { %v325_v42 = vmul.f32 0.5, %v296_v40 }
 0x1c5   :  { %v300_v43 = vpop.f32.mrb[18].mxu1 }
 0x1c6   :  { %977 = vtanh.f32 %v325_v42  ;;  %v301_v44 = vadd.f32 %v674_v34, %v300_v43  ;;  %v815_v45 = vpop.f32.mrb[19].mxu1 }
 0x1c8   :  { %v326_v46 = vmul.f32 0.5, %v301_v44 }
 0x1c9   :  { %v305_v47 = vpop.f32.mrb[20].mxu1 }
 0x1ca   :  { %979 = vtanh.f32 %v326_v46  ;;  %v306_v48 = vadd.f32 %v674_v34, %v305_v47  ;;  %v818_v49 = vpop.f32.mrb[21].mxu1 }
 0x1cc   :  { %v976_v52 = vpop.eup %975  ;;  %v327_v53 = vmul.f32 0.5, %v306_v48 }
 0x1cd   :  { %v338_v54 = vadd.f32 1.0, %v976_v52  ;;  %v310_v55 = vpop.f32.mrb[22].mxu1 }
 0x1ce   :  { %981 = vtanh.f32 %v327_v53  ;;  %v311_v56 = vadd.f32 %v674_v34, %v310_v55  ;;  %v821_v57 = vpop.f32.mrb[23].mxu1 }
 0x1cf   :  { %v345_v59 = vmul.f32 %v338_v54, %v324_v38 }
 0x1d0   :  { %v978_v60 = vpop.eup %977  ;;  %v328_v61 = vmul.f32 0.5, %v311_v56 }
 0x1d1   :  { %v339_v62 = vadd.f32 1.0, %v978_v60  ;;  %v315_v63 = vpop.f32.mrb[24].mxu1  ;;  %845 = vmatmul.mubr.msk.f32.vlgmr.msra.gmra.mrb[0].mxu0 %vm367_vm3, %v345_v59 }
 0x1d2   :  { %983 = vtanh.f32 %v328_v61  ;;  %v316_v1 = vadd.f32 %v674_v34, %v315_v63  ;;  %v824_v2 = vpop.f32.mrb[25].mxu1  ;;  %847 = vmatprep.mubr.msk.f32.mxu0 %vm1004_vm2, %v1003_v0  ;;  %940 = vmatpush3.bf16.msra.mxu0 %v939_v58 }
 0x1d3   :  { %v346_v4 = vmul.f32 %v339_v62, %v325_v42  ;;  %941 = vmatprep.subr.bf16.mxu0 %v1005_v3 }
 0x1d4   :  { %v980_v5 = vpop.eup %979  ;;  %v329_v6 = vmul.f32 0.5, %v316_v1 }
 0x1d5   :  { %v340_v7 = vadd.f32 1.0, %v980_v5  ;;  %v320_v8 = vpop.f32.mrb[26].mxu1  ;;  %848 = vmatmul.mubr.msk.f32.gmra.mrb[2].mxu0 %vm367_vm3, %v346_v4 }
 0x1d6   :  { %985 = vtanh.f32 %v329_v6  ;;  %v321_v9 = vadd.f32 %v674_v34, %v320_v8  ;;  %v827_v10 = vpop.f32.mrb[27].mxu1  ;;  %850 = vmatprep.mubr.msk.f32.mxu0 %vm1004_vm2, %v1003_v0  ;;  %943 = vmatpush3.bf16.msra.mxu0 %v942_v27  ;;  %v675_v34 = vld [vmem:[%s1321_s6] ss:$0 sm:$0xff] }
 0x1d7   :  { %v347_v11 = vmul.f32 %v340_v7, %v326_v46  ;;  %944 = vmatprep.subr.bf16.mxu0 %v1005_v3 }
 0x1d8   :  { %v982_v12 = vpop.eup %981  ;;  %v330_v13 = vmul.f32 0.5, %v321_v9 }
 0x1d9   :  { %v341_v14 = vadd.f32 1.0, %v982_v12  ;;  %851 = vmatmul.mubr.msk.f32.gmra.mrb[4].mxu0 %vm367_vm3, %v347_v11 }
 0x1da   :  { %987 = vtanh.f32 %v330_v13  ;;  %853 = vmatprep.mubr.msk.f32.mxu0 %vm1004_vm2, %v1003_v0  ;;  %946 = vmatpush3.bf16.msra.mxu0 %v945_v30 }
 0x1db   :  { %v348_v15 = vmul.f32 %v341_v14, %v327_v53  ;;  %947 = vmatprep.subr.bf16.mxu0 %v1005_v3 }
 0x1dc   :  { %v984_v16 = vpop.eup %983 }
 0x1dd   :  { %v342_v17 = vadd.f32 1.0, %v984_v16  ;;  %854 = vmatmul.mubr.msk.f32.gmra.mrb[6].mxu0 %vm367_vm3, %v348_v15 }
 0x1de   :  { %856 = vmatprep.mubr.msk.f32.mxu0 %vm1004_vm2, %v1003_v0  ;;  %949 = vmatpush3.bf16.msra.mxu0 %v948_v33 }
 0x1df   :  { %v349_v18 = vmul.f32 %v342_v17, %v328_v61 }
 0x1e0   :  { %v986_v19 = vpop.eup %985 }
 0x1e1   :  { %v343_v20 = vadd.f32 1.0, %v986_v19  ;;  %857 = vmatmul.mubr.msk.f32.gmra.mrb[8].mxu0 %vm367_vm3, %v349_v18 }
 0x1e2   :  { %859 = vmatprep.mubr.msk.f32.mxu0 %vm1004_vm2, %v1003_v0 }
 0x1e3   :  { %v350_v21 = vmul.f32 %v343_v20, %v329_v6 }
 0x1e4   :  { %v988_v22 = vpop.eup %987 }
 0x1e5   :  { %v344_v23 = vadd.f32 1.0, %v988_v22  ;;  %860 = vmatmul.mubr.msk.f32.gmra.mrb[10].mxu0 %vm367_vm3, %v350_v21  ;;  %v683_v21 = vld [vmem:[%s1322_s8] ss:$0 sm:$0xff] }
 0x1e6   :  { %881 = vmatprep.mubr.msk.f32.mxu0 %vm1004_vm2, %v1003_v0 }
 0x1e7   :  { %v351_v24 = vmul.f32 %v344_v23, %v330_v13 }
 0x1e9   :  { %863 = vmatmul.mubr.msk.f32.vlgmr.msra.gmra.mrb[28].mxu1 %vm367_vm3, %v351_v24 }
 0x2a4   :  { %v455_v35 = vpop.f32.mrb[0].mxu0 }
 0x2a5   :  { %v456_v36 = vadd.f32 %v675_v34, %v455_v35  ;;  %v846_v37 = vpop.f32.mrb[1].mxu0 }
 0x2a7   :  { %v489_v38 = vmul.f32 0.5, %v456_v36 }
 0x2a8   :  { %v460_v39 = vpop.f32.mrb[2].mxu0 }
 0x2a9   :  { %989 = vtanh.f32 %v489_v38  ;;  %v461_v3 = vadd.f32 %v675_v34, %v460_v39  ;;  %v849_v40 = vpop.f32.mrb[3].mxu0 }
 0x2ab   :  { %v490_v41 = vmul.f32 0.5, %v461_v3 }
 0x2ac   :  { %v465_v42 = vpop.f32.mrb[4].mxu0 }
 0x2ad   :  { %991 = vtanh.f32 %v490_v41  ;;  %v466_v43 = vadd.f32 %v675_v34, %v465_v42  ;;  %v852_v44 = vpop.f32.mrb[5].mxu0 }
 0x2af   :  { %v491_v45 = vmul.f32 0.5, %v466_v43 }
 0x2b0   :  { %v470_v46 = vpop.f32.mrb[6].mxu0 }
 0x2b1   :  { %993 = vtanh.f32 %v491_v45  ;;  %v471_v47 = vadd.f32 %v675_v34, %v470_v46  ;;  %v855_v48 = vpop.f32.mrb[7].mxu0 }
 0x2b3   :  { %v990_v49 = vpop.eup %989  ;;  %v492_v50 = vmul.f32 0.5, %v471_v47 }
 0x2b4   :  { %v503_v51 = vadd.f32 1.0, %v990_v49  ;;  %v475_v52 = vpop.f32.mrb[8].mxu0 }
 0x2b5   :  { %995 = vtanh.f32 %v492_v50  ;;  %v476_v53 = vadd.f32 %v675_v34, %v475_v52  ;;  %v858_v54 = vpop.f32.mrb[9].mxu0 }
 0x2b6   :  { %v510_v55 = vmul.f32 %v503_v51, %v489_v38 }
 0x2b7   :  { %v992_v56 = vpop.eup %991  ;;  %v493_v57 = vmul.f32 0.5, %v476_v53 }
 0x2b8   :  { %v504_v58 = vadd.f32 1.0, %v992_v56  ;;  %v480_v59 = vpop.f32.mrb[10].mxu0  ;;  %882 = vmatmul.mubr.msk.f32.vlgmr.msra.gmra.mrb[12].mxu0 %vm367_vm3, %v510_v55 }
 0x2b9   :  { %997 = vtanh.f32 %v493_v57  ;;  %v481_v60 = vadd.f32 %v675_v34, %v480_v59  ;;  %v861_v61 = vpop.f32.mrb[11].mxu0  ;;  %884 = vmatprep.mubr.msk.f32.mxu0 %vm1004_vm2, %v1003_v0 }
 0x2ba   :  { %v511_v62 = vmul.f32 %v504_v58, %v490_v41 }
 0x2bb   :  { %v994_v63 = vpop.eup %993  ;;  %v494_v1 = vmul.f32 0.5, %v481_v60 }
 0x2bc   :  { %v505_v2 = vadd.f32 1.0, %v994_v63  ;;  %v485_v4 = vpop.f32.mrb[28].mxu1  ;;  %885 = vmatmul.mubr.msk.f32.gmra.mrb[14].mxu0 %vm367_vm3, %v511_v62 }
 0x2bd   :  { %999 = vtanh.f32 %v494_v1  ;;  %v486_v5 = vadd.f32 %v675_v34, %v485_v4  ;;  %v864_v6 = vpop.f32.mrb[29].mxu1  ;;  %887 = vmatprep.mubr.msk.f32.mxu0 %vm1004_vm2, %v1003_v0 }
 0x2be   :  { %v512_v7 = vmul.f32 %v505_v2, %v491_v45 }
 0x2bf   :  { %v996_v8 = vpop.eup %995  ;;  %v495_v9 = vmul.f32 0.5, %v486_v5 }
 0x2c0   :  { %v506_v10 = vadd.f32 1.0, %v996_v8  ;;  %888 = vmatmul.mubr.msk.f32.gmra.mrb[16].mxu0 %vm367_vm3, %v512_v7 }
 0x2c1   :  { %1001 = vtanh.f32 %v495_v9  ;;  %890 = vmatprep.mubr.msk.f32.mxu0 %vm1004_vm2, %v1003_v0 }
 0x2c2   :  { %v513_v11 = vmul.f32 %v506_v10, %v492_v50 }
 0x2c3   :  { %v998_v12 = vpop.eup %997 }
 0x2c4   :  { %v507_v13 = vadd.f32 1.0, %v998_v12  ;;  %891 = vmatmul.mubr.msk.f32.gmra.mrb[18].mxu0 %vm367_vm3, %v513_v11 }
 0x2c5   :  { %893 = vmatprep.mubr.msk.f32.mxu0 %vm1004_vm2, %v1003_v0 }
 0x2c6   :  { %v514_v14 = vmul.f32 %v507_v13, %v493_v57 }
 0x2c7   :  { %v1000_v15 = vpop.eup %999 }
 0x2c8   :  { %v508_v16 = vadd.f32 1.0, %v1000_v15  ;;  %894 = vmatmul.mubr.msk.f32.gmra.mrb[20].mxu0 %vm367_vm3, %v514_v14 }
 0x2c9   :  { %896 = vmatprep.mubr.msk.f32.mxu0 %vm1004_vm2, %v1003_v0 }
 0x2ca   :  { %v515_v17 = vmul.f32 %v508_v16, %v494_v1 }
 0x2cb   :  { %v1002_v18 = vpop.eup %1001 }
 0x2cc   :  { %v509_v19 = vadd.f32 1.0, %v1002_v18  ;;  %897 = vmatmul.mubr.msk.f32.gmra.mrb[22].mxu0 %vm367_vm3, %v515_v17 }
 0x2cd   :  { %899 = vmatprep.mubr.msk.f32.mxu0 %vm1004_vm2, %v1003_v0 }
 0x2ce   :  { %v516_v20 = vmul.f32 %v509_v19, %v495_v9 }
 0x2d0   :  { %900 = vmatmul.mubr.msk.f32.gmra.mrb[24].mxu0 %vm367_vm3, %v516_v20 }
 0x38b   :  { %v619_v22 = vpop.f32.mrb[12].mxu0 }
 0x38c   :  { %v620_v23 = vadd.f32 %v683_v21, %v619_v22  ;;  %v883_v24 = vpop.f32.mrb[13].mxu0 }
 0x38e   :  { %654 = vst.msk [vmem:[%s1323_s9] sm:$0xff] %vm653_vm4, %v620_v23 }
 0x38f   :  { %v624_v25 = vpop.f32.mrb[14].mxu0 }
 0x390   :  { %v625_v26 = vadd.f32 %v683_v21, %v624_v25  ;;  %v886_v27 = vpop.f32.mrb[15].mxu0 }
 0x392   :  { %655 = vst.msk [vmem:[%s1323_s9 + $0x8] sm:$0xff] %vm653_vm4, %v625_v26 }
 0x393   :  { %v629_v0 = vpop.f32.mrb[16].mxu0 }
 0x394   :  { %v630_v28 = vadd.f32 %v683_v21, %v629_v0  ;;  %v889_v29 = vpop.f32.mrb[17].mxu0 }
 0x396   :  { %656 = vst.msk [vmem:[%s1323_s9 + $0x10] sm:$0xff] %vm653_vm4, %v630_v28 }
 0x397   :  { %v634_v30 = vpop.f32.mrb[18].mxu0 }
 0x398   :  { %v635_v31 = vadd.f32 %v683_v21, %v634_v30  ;;  %v892_v32 = vpop.f32.mrb[19].mxu0 }
 0x39a   :  { %657 = vst.msk [vmem:[%s1323_s9 + $0x18] sm:$0xff] %vm653_vm4, %v635_v31 }
 0x39b   :  { %v639_v33 = vpop.f32.mrb[20].mxu0 }
 0x39c   :  { %v640_v34 = vadd.f32 %v683_v21, %v639_v33  ;;  %v895_v35 = vpop.f32.mrb[21].mxu0 }
 0x39e   :  { %658 = vst.msk [vmem:[%s1323_s9 + $0x20] sm:$0xff] %vm653_vm4, %v640_v34 }
 0x39f   :  { %v644_v36 = vpop.f32.mrb[22].mxu0 }
 0x3a0   :  { %v645_v37 = vadd.f32 %v683_v21, %v644_v36  ;;  %v898_v38 = vpop.f32.mrb[23].mxu0 }
 0x3a2   :  { %659 = vst.msk [vmem:[%s1323_s9 + $0x28] sm:$0xff] %vm653_vm4, %v645_v37 }
 0x3a3   :  { %v649_v39 = vpop.f32.mrb[24].mxu0 }
 0x3a4   :  { %v650_v3 = vadd.f32 %v683_v21, %v649_v39  ;;  %v901_v40 = vpop.f32.mrb[25].mxu0 }
 0x3a6   :  { %660 = vst.msk [vmem:[%s1323_s9 + $0x30] sm:$0xff] %vm653_vm4, %v650_v3 }

</bundles_post_ra>
